<compile_context>
chip_gen: v6e
topology: v6e:2x2x1
jax: 0.10.0
libtpu: 0.0.40
codegen_flags: <defaults>
</compile_context>

<pallas_src>
import functools

import numpy as np

import jax
import jax.numpy as jnp
from jax.experimental import pallas as pl
from jax.experimental.pallas import tpu as pltpu

LANE = 128


def _round_up(x, m):
    return (x + m - 1) // m * m


def _pad2(x, rows, cols):
    r, c = x.shape
    return jnp.pad(x, ((0, rows - r), (0, cols - c)))


def _gate_dtype():
    """bf16 gate math only on chips with a bf16 VPU/EUP path (v6e / v7x)."""
    try:
        kind = jax.devices()[0].device_kind.lower()
    except Exception:
        return jnp.float32
    if any(tag in kind for tag in ("v6", "v7", "7x")):
        return jnp.bfloat16
    return jnp.float32


# ------------------------------ linear kernels -------------------------------

def _linear_kernel(x_ref, w_ref, b_ref, o_ref):
    y = jnp.dot(x_ref[...], w_ref[...], preferred_element_type=jnp.float32)
    o_ref[...] = (y + b_ref[...]).astype(o_ref.dtype)


def linear(x, w, b, out_dtype):
    n_pad, din = x.shape
    dout = w.shape[1]
    tile_n = 256 if n_pad % 256 == 0 else 128
    return pl.pallas_call(
        _linear_kernel,
        out_shape=jax.ShapeDtypeStruct((n_pad, dout), out_dtype),
        grid_spec=pltpu.PrefetchScalarGridSpec(
            num_scalar_prefetch=0,
            grid=(n_pad // tile_n,),
            in_specs=[pl.BlockSpec((tile_n, din), lambda i: (i, 0)),
                      pl.BlockSpec((din, dout), lambda i: (0, 0)),
                      pl.BlockSpec((1, dout), lambda i: (0, 0))],
            out_specs=pl.BlockSpec((tile_n, dout), lambda i: (i, 0))),
        compiler_params=pltpu.CompilerParams(dimension_semantics=("parallel",)),
    )(x, w, b)


def _proj_kernel(x_ref, w_ref, b_ref, od_ref, os_ref, *, dd):
    # Fused per-layer projection:  h @ [A|D|B|E] + b  ->  ([Ah|Dh], [Bh|Eh]).
    y = jnp.dot(x_ref[...], w_ref[...], preferred_element_type=jnp.float32) + b_ref[...]
    od_ref[...] = y[:, :dd].astype(od_ref.dtype)
    os_ref[...] = y[:, dd:].astype(os_ref.dtype)


def project(h, w_all, b_all):
    n_pad, d = h.shape
    d4 = w_all.shape[1]
    dd = d4 // 2
    tile_n = 256 if n_pad % 256 == 0 else 128
    return pl.pallas_call(
        functools.partial(_proj_kernel, dd=dd),
        out_shape=(jax.ShapeDtypeStruct((n_pad, dd), jnp.bfloat16),
                   jax.ShapeDtypeStruct((n_pad, dd), jnp.bfloat16)),
        grid_spec=pltpu.PrefetchScalarGridSpec(
            num_scalar_prefetch=0,
            grid=(n_pad // tile_n,),
            in_specs=[pl.BlockSpec((tile_n, d), lambda i: (i, 0)),
                      pl.BlockSpec((d, d4), lambda i: (0, 0)),
                      pl.BlockSpec((1, d4), lambda i: (0, 0))],
            out_specs=(pl.BlockSpec((tile_n, dd), lambda i: (i, 0)),
                       pl.BlockSpec((tile_n, dd), lambda i: (i, 0)))),
        compiler_params=pltpu.CompilerParams(dimension_semantics=("parallel",)),
    )(h, w_all, b_all)


# --------------------------- gated GCN layer kernel --------------------------

def _gated_gcn_kernel(jblk_ref, jcnt_ref,                 # scalar prefetch (SMEM, 1-D)
                      pd_ref, ps_ref, adj_ref, h_ref, bn_ref,
                      o_ref,
                      num_ref, den_ref,                   # f32 VMEM accumulators
                      *, d, chunk, residual, gate_dtype):
    i = pl.program_id(0)
    jj = pl.program_id(1)
    nj = pl.num_programs(1)

    @pl.when(jj == 0)
    def _init():
        num_ref[...] = jnp.zeros_like(num_ref)
        den_ref[...] = jnp.zeros_like(den_ref)

    # Only the first jcnt[i] entries of this dst-block's src-block list are real work;
    # padded entries repeat the last valid index (so their DMA is a no-op re-use).
    @pl.when(jj < jcnt_ref[i])
    def _accumulate():
        bh = ps_ref[:, :d].astype(gate_dtype)          # [TJ, D]  B h_j
        eh = ps_ref[:, d:].astype(gate_dtype)          # [TJ, D]  E h_j
        n_chunks = pd_ref.shape[0] // chunk

        def body(c, carry):
            off = pl.multiple_of(c * chunk, chunk)
            dh_c = pd_ref[pl.ds(off, chunk), d:].astype(gate_dtype)    # [CA, D]  D h_i
            adj_c = adj_ref[pl.ds(off, chunk), :].astype(gate_dtype)   # [CA, TJ]
            x = dh_c[:, None, :] + eh[None, :, :]                      # [CA, TJ, D]
            # sigmoid(x) = 0.5*tanh(0.5*x) + 0.5  (single EUP transcendental)
            g = (jnp.tanh(x * 0.5) * 0.5 + 0.5) * adj_c[:, :, None]
            num_ref[pl.ds(off, chunk), :] += (
                jnp.sum(g * bh[None, :, :], axis=1).astype(jnp.float32))
            den_ref[pl.ds(off, chunk), :] += jnp.sum(g, axis=1).astype(jnp.float32)
            return carry

        jax.lax.fori_loop(0, n_chunks, body, 0)

    @pl.when(jj == nj - 1)
    def _finalize():
        ah = pd_ref[:, :d].astype(jnp.float32)                         # A h_i
        hn = ah + num_ref[...] * pl.reciprocal(den_ref[...] + 1e-6, approx=True)
        hn = hn * bn_ref[0:1, :] + bn_ref[1:2, :]                      # folded eval-mode BN
        hn = jnp.maximum(hn, 0.0)                                      # ReLU
        if residual:
            hn = h_ref[...].astype(jnp.float32) + hn
        # TODO(synk): dropout is identity at inference (training-mode RNG mask not implemented).
        o_ref[...] = hn.astype(o_ref.dtype)


def gated_gcn_layer(h, adj_i8, jblk, jcnt, max_nnz, lp, *, residual,
                    tile_i=128, tile_j=128, chunk=16):
    n_pad, d = h.shape
    assert n_pad % tile_i == 0 and n_pad % tile_j == 0 and tile_i % chunk == 0
    num_i = n_pad // tile_i
    gate_dtype = _gate_dtype()

    # Hoisted projections (one MXU pass per layer, bf16 to HBM).
    proj_d, proj_s = project(h, lp["w_all"], lp["b_all"])     # [n_pad, 2d] each

    def dst_map(i, jj, jb, jc):
        return (i, 0)

    def src_map(i, jj, jb, jc):
        return (jb[i * max_nnz + jj], 0)

    def adj_map(i, jj, jb, jc):
        return (i, jb[i * max_nnz + jj])

    def bn_map(i, jj, jb, jc):
        return (0, 0)

    n_steps = num_i * max_nnz
    cost = pl.CostEstimate(
        flops=int(8 * n_steps * tile_i * tile_j * d),
        transcendentals=int(n_steps * tile_i * tile_j * d),
        bytes_accessed=int(n_steps * (tile_i * tile_j                # adj (int8), per step
                                      + tile_j * 2 * d * 2)          # src proj (bf16), per step
                           + num_i * (tile_i * 2 * d * 2             # dst proj, once per i
                                      + 2 * tile_i * d * 2)),        # h in + h out
    )

    kernel = functools.partial(_gated_gcn_kernel, d=d, chunk=chunk,
                               residual=residual, gate_dtype=gate_dtype)
    return pl.pallas_call(
        kernel,
        out_shape=jax.ShapeDtypeStruct((n_pad, d), jnp.bfloat16),
        grid_spec=pltpu.PrefetchScalarGridSpec(
            num_scalar_prefetch=2,                         # jblk (1-D), jcnt (1-D)
            grid=(num_i, max_nnz),
            in_specs=[
                pl.BlockSpec((tile_i, 2 * d), dst_map),    # [Ah | Dh] dst rows
                pl.BlockSpec((tile_j, 2 * d), src_map),    # [Bh | Eh] gathered src blocks
                pl.BlockSpec((tile_i, tile_j), adj_map),   # int8 adjacency tile
                pl.BlockSpec((tile_i, d), dst_map),        # residual input h
                pl.BlockSpec((2, d), bn_map),              # folded BN scale/shift
            ],
            out_specs=pl.BlockSpec((tile_i, d), dst_map),
            scratch_shapes=[pltpu.VMEM((tile_i, d), jnp.float32),    # num accumulator
                            pltpu.VMEM((tile_i, d), jnp.float32)]),  # den accumulator
        compiler_params=pltpu.CompilerParams(
            dimension_semantics=("parallel", "arbitrary")),
        cost_estimate=cost,
    )(jblk, jcnt, proj_d, proj_s, adj_i8, h, lp["bn"])


# --------------------------- fused MLP readout kernel ------------------------

def _readout_kernel(h_ref, w0_ref, b0_ref, w1_ref, b1_ref, w2_ref, b2_ref, o_ref):
    y = jnp.dot(h_ref[...], w0_ref[...], preferred_element_type=jnp.float32) + b0_ref[...]
    y = jnp.maximum(y, 0.0)
    y = jnp.dot(y.astype(jnp.bfloat16), w1_ref[...],
                preferred_element_type=jnp.float32) + b1_ref[...]
    y = jnp.maximum(y, 0.0)
    y = jnp.dot(y.astype(jnp.bfloat16), w2_ref[...],
                preferred_element_type=jnp.float32) + b2_ref[...]
    o_ref[...] = y


def mlp_readout(h, ro):
    n_pad, d0 = h.shape
    d1 = ro["w0"].shape[1]
    d2 = ro["w1"].shape[1]
    d3 = ro["w2"].shape[1]
    tile_n = 256 if n_pad % 256 == 0 else 128
    return pl.pallas_call(
        _readout_kernel,
        out_shape=jax.ShapeDtypeStruct((n_pad, d3), jnp.float32),
        grid_spec=pltpu.PrefetchScalarGridSpec(
            num_scalar_prefetch=0,
            grid=(n_pad // tile_n,),
            in_specs=[pl.BlockSpec((tile_n, d0), lambda i: (i, 0)),
                      pl.BlockSpec((d0, d1), lambda i: (0, 0)),
                      pl.BlockSpec((1, d1), lambda i: (0, 0)),
                      pl.BlockSpec((d1, d2), lambda i: (0, 0)),
                      pl.BlockSpec((1, d2), lambda i: (0, 0)),
                      pl.BlockSpec((d2, d3), lambda i: (0, 0)),
                      pl.BlockSpec((1, d3), lambda i: (0, 0))],
            out_specs=pl.BlockSpec((tile_n, d3), lambda i: (i, 0))),
        compiler_params=pltpu.CompilerParams(dimension_semantics=("parallel",)),
    )(h, ro["w0"], ro["b0"], ro["w1"], ro["b1"], ro["w2"], ro["b2"])


# -------------------------- parameter construction --------------------------

def _init_linear(key, din, dout):
    k1, k2 = jax.random.split(key)
    bound = 1.0 / jnp.sqrt(jnp.float32(din))
    w = jax.random.uniform(k1, (din, dout), jnp.float32, -bound, bound)
    b = jax.random.uniform(k2, (dout,), jnp.float32, -bound, bound)
    return w, b


def init_gated_gcn_net(key, in_dim, hidden_dim, out_dim, n_classes, n_layers, readout):
    keys = jax.random.split(key, 64)
    ki = iter(range(64))

    raw = {}
    raw["emb_w"], raw["emb_b"] = _init_linear(keys[next(ki)], in_dim, hidden_dim)

    if not readout:
        out_dim = n_classes

    layer_dims = [(hidden_dim, hidden_dim)] * (n_layers - 1) + [(hidden_dim, out_dim)]
    raw["layers"] = []
    for din, dout in layer_dims:
        lp = {}
        for name in ("A", "B", "D", "E"):
            lp[f"{name}_w"], lp[f"{name}_b"] = _init_linear(keys[next(ki)], din, dout)
        lp["bn_gamma"] = jnp.ones((dout,), jnp.float32)
        lp["bn_beta"] = jnp.zeros((dout,), jnp.float32)
        lp["bn_mean"] = jnp.zeros((dout,), jnp.float32)
        lp["bn_var"] = jnp.ones((dout,), jnp.float32)
        raw["layers"].append(lp)

    if readout:  # MLPReadout(out_dim, n_classes) with L=2 halving layers
        dims = [out_dim, out_dim // 2, out_dim // 4, n_classes]
        raw["readout"] = [
            _init_linear(keys[next(ki)], dims[i], dims[i + 1]) for i in range(3)
        ]
    return raw


def pack_params(raw, *, batch_norm=True, bn_eps=1e-5):
    """Pad to lane-dense widths, fuse A|D|B|E projections, fold eval-mode BN, cast bf16."""
    in_dim, hidden = raw["emb_w"].shape
    in_pad = _round_up(in_dim, LANE)
    all_dims = set()
    for lp in raw["layers"]:
        all_dims.add(lp["A_w"].shape[0])
        all_dims.add(lp["A_w"].shape[1])
    d_pad = _round_up(max(all_dims), LANE)

    packed = {"in_pad": in_pad, "d_pad": d_pad}
    packed["emb_w"] = _pad2(raw["emb_w"], in_pad, d_pad).astype(jnp.bfloat16)
    packed["emb_b"] = _pad2(raw["emb_b"].reshape(1, -1), 1, d_pad)

    packed["layers"] = []
    for lp in raw["layers"]:
        din, dout = lp["A_w"].shape
        # Column layout [A | D | B | E]; kernel splits at 2*d_pad into dst / src halves.
        w_all = jnp.concatenate([_pad2(lp[f"{n}_w"], d_pad, d_pad) for n in "ADBE"], axis=1)
        b_all = jnp.concatenate([_pad2(lp[f"{n}_b"].reshape(1, -1), 1, d_pad) for n in "ADBE"],
                                axis=1)
        if batch_norm:
            scale = lp["bn_gamma"] * jax.lax.rsqrt(lp["bn_var"] + bn_eps)
            shift = lp["bn_beta"] - lp["bn_mean"] * scale
        else:
            scale = jnp.ones((dout,), jnp.float32)
            shift = jnp.zeros((dout,), jnp.float32)
        bn = jnp.concatenate([_pad2(scale.reshape(1, -1), 1, d_pad),
                              _pad2(shift.reshape(1, -1), 1, d_pad)], axis=0)
        packed["layers"].append({
            "w_all": w_all.astype(jnp.bfloat16), "b_all": b_all,
            "bn": bn, "residual_ok": (din == dout),
        })

    if "readout" in raw:
        dims = [raw["readout"][0][0].shape[0]] + [w.shape[1] for w, _ in raw["readout"]]
        pdims = [d_pad] + [_round_up(x, LANE) for x in dims[1:]]
        ro = {}
        for idx, (w, b) in enumerate(raw["readout"]):
            ro[f"w{idx}"] = _pad2(w, pdims[idx], pdims[idx + 1]).astype(jnp.bfloat16)
            ro[f"b{idx}"] = _pad2(b.reshape(1, -1), 1, pdims[idx + 1])
        packed["readout"] = ro
        packed["n_out"] = dims[-1]
    else:
        packed["n_out"] = raw["layers"][-1]["A_w"].shape[1]
    return packed


# --------------------------------- forward ----------------------------------

def gated_gcn_net_forward(packed, feature, edge_index, n_nodes,
                          *, residual=True, tile_i=128, tile_j=128):
    in_pad, d_pad = packed["in_pad"], packed["d_pad"]
    n_pad = _round_up(max(n_nodes, 1), max(tile_i, tile_j))
    num_i, num_j = n_pad // tile_i, n_pad // tile_j

    # Host-side glue (runs once per graph, outside the kernels): densify edge_index into an
    # int8 multiplicity adjacency adj[dst, src] and build the compressed reduction-axis
    # tables (per-dst-block list of nonzero src blocks + counts) for the streaming kernel.
    ei = np.asarray(jax.device_get(edge_index))
    src, dst = ei[0], ei[1]
    adj_np = np.zeros((n_pad, n_pad), np.int32)
    np.add.at(adj_np, (dst, src), 1)
    adj_i8 = jnp.asarray(np.minimum(adj_np, 127).astype(np.int8))

    blk_nnz = adj_np.reshape(num_i, tile_i, num_j, tile_j).sum(axis=(1, 3))
    jcnt_np = (blk_nnz > 0).sum(axis=1).astype(np.int32)
    max_nnz = max(1, int(jcnt_np.max()))
    jblk_np = np.zeros((num_i, max_nnz), np.int32)
    for r in range(num_i):
        nz = np.nonzero(blk_nnz[r] > 0)[0]
        if nz.size:
            jblk_np[r, :nz.size] = nz
            jblk_np[r, nz.size:] = nz[-1]      # repeat last index -> padded steps re-use DMA
    jblk = jnp.asarray(jblk_np.reshape(-1))    # 1-D SMEM table (avoids 2-D SMEM lane padding)
    jcnt = jnp.asarray(jcnt_np)

    x = jnp.zeros((n_pad, in_pad), jnp.float32)
    x = x.at[:n_nodes, :feature.shape[1]].set(feature).astype(jnp.bfloat16)

    h = linear(x, packed["emb_w"], packed["emb_b"], jnp.bfloat16)      # embedding_h
    for lp in packed["layers"]:
        h = gated_gcn_layer(h, adj_i8, jblk, jcnt, max_nnz, lp,
                            residual=residual and lp["residual_ok"],
                            tile_i=tile_i, tile_j=tile_j)
    if "readout" in packed:
        out = mlp_readout(h, packed["readout"])
    else:
        out = h.astype(jnp.float32)
    return out[:n_nodes, :packed["n_out"]]


# ----------------------------------- main ------------------------------------

if __name__ == "__main__":
    N_NODES = 32
    IN_DIM = 16
    HIDDEN = 32
    OUT_DIM = 32
    N_CLASSES = 4
    N_LAYERS = 2
    READOUT = True

    key = jax.random.PRNGKey(0)
    k_param, k_feat, k_edge = jax.random.split(key, 3)

    raw = init_gated_gcn_net(k_param, IN_DIM, HIDDEN, OUT_DIM,
                             N_CLASSES, N_LAYERS, READOUT)
    params = pack_params(raw, batch_norm=True)

    feature = jax.random.normal(k_feat, (N_NODES, IN_DIM), jnp.float32)

    # Deterministic small graph: a ring plus a few random chords, both directions.
    ring_src = jnp.arange(N_NODES, dtype=jnp.int32)
    ring_dst = (ring_src + 1) % N_NODES
    rnd_src = jax.random.randint(k_edge, (16,), 0, N_NODES, jnp.int32)
    rnd_dst = (rnd_src + 7) % N_NODES
    src = jnp.concatenate([ring_src, ring_dst, rnd_src, rnd_dst])
    dst = jnp.concatenate([ring_dst, ring_src, rnd_dst, rnd_src])
    edge_index = jnp.stack([src, dst], axis=0)                      # (2, E)

    out = gated_gcn_net_forward(params, feature, edge_index, N_NODES,
                                residual=True)
    out = jax.block_until_ready(out)
    assert out.shape == (N_NODES, N_CLASSES)
    assert jnp.all(jnp.isfinite(out))
    print("KERNEL_OK")
</pallas_src>

<mosaic_0001>
module attributes {stable_mosaic.version = 11 : i64} {
  func.func @_linear_kernel(%arg0: i32, %arg1: memref<128x128xbf16, #tpu.memory_space<vmem>>, %arg2: memref<128x128xbf16, #tpu.memory_space<vmem>>, %arg3: memref<1x128xf32, #tpu.memory_space<vmem>>, %arg4: memref<128x128xbf16, #tpu.memory_space<vmem>>) attributes {dimension_semantics = [#tpu.dimension_semantics<parallel>], iteration_bounds = array<i64: 1>, scalar_prefetch = 0 : i64, scratch_operands = 0 : i64, tpu.core_type = #tpu.core_type<tc>, window_params = [{transform_indices = @transform_0, window_bounds = array<i64: 128, 128>}, {pipeline_mode = #tpu.pipeline_mode<synchronous>, transform_indices = @transform_1, window_bounds = array<i64: 128, 128>}, {pipeline_mode = #tpu.pipeline_mode<synchronous>, transform_indices = @transform_2, window_bounds = array<i64: 1, 128>}, {transform_indices = @transform_3, window_bounds = array<i64: 128, 128>}]} {
    %c0 = arith.constant 0 : index
    %c0_0 = arith.constant 0 : index
    %0 = vector.load %arg1[%c0, %c0_0] : memref<128x128xbf16, #tpu.memory_space<vmem>>, vector<128x128xbf16>
    %c0_1 = arith.constant 0 : index
    %c0_2 = arith.constant 0 : index
    %1 = vector.load %arg2[%c0_1, %c0_2] : memref<128x128xbf16, #tpu.memory_space<vmem>>, vector<128x128xbf16>
    %cst = arith.constant dense<0.000000e+00> : vector<128x128xf32>
    %2 = tpu.matmul %0, %1, %cst {dimension_numbers = #tpu.dot_dimension_numbers<[1], [0], [0], [1], [0, 0, 1, 1], [], []>} : vector<128x128xbf16>, vector<128x128xbf16>, vector<128x128xf32> -> vector<128x128xf32>
    %c0_3 = arith.constant 0 : index
    %c0_4 = arith.constant 0 : index
    %3 = vector.load %arg3[%c0_3, %c0_4] : memref<1x128xf32, #tpu.memory_space<vmem>>, vector<1x128xf32>
    %4 = vector.broadcast %3 : vector<1x128xf32> to vector<128x128xf32>
    %5 = arith.addf %2, %4 : vector<128x128xf32>
    %6 = arith.truncf %5 : vector<128x128xf32> to vector<128x128xbf16>
    %c0_5 = arith.constant 0 : index
    %c0_6 = arith.constant 0 : index
    %7 = vector.load %arg4[%c0_5, %c0_6] : memref<128x128xbf16, #tpu.memory_space<vmem>>, vector<128x128xbf16>
    tpu.vector_store %arg4[%c0_5, %c0_6], %6 {strides = array<i32>} : memref<128x128xbf16, #tpu.memory_space<vmem>>, vector<128x128xbf16>,
    return
  }
  func.func @transform_0(%arg0: i32) -> (i32, i32) {
    %c0_i32 = arith.constant 0 : i32
    %c0_i32_0 = arith.constant 0 : i32
    return %arg0, %c0_i32 : i32, i32
  }
  func.func @transform_1(%arg0: i32) -> (i32, i32) {
    %c0_i32 = arith.constant 0 : i32
    %c0_i32_0 = arith.constant 0 : i32
    %c0_i32_1 = arith.constant 0 : i32
    return %c0_i32, %c0_i32_0 : i32, i32
  }
  func.func @transform_2(%arg0: i32) -> (i32, i32) {
    %c0_i32 = arith.constant 0 : i32
    %c0_i32_0 = arith.constant 0 : i32
    %c0_i32_1 = arith.constant 0 : i32
    return %c0_i32, %c0_i32_0 : i32, i32
  }
  func.func @transform_3(%arg0: i32) -> (i32, i32) {
    %c0_i32 = arith.constant 0 : i32
    %c0_i32_0 = arith.constant 0 : i32
    return %arg0, %c0_i32 : i32, i32
  }
}

</mosaic_0001>

<bundles_post_ra>
// kernel: tpu_custom_call.1
= control target key start
LH: loop header
LB: loop body
LE: loop exit
PB: predicated region body
PF: predicated region fallthrough
CT: control target
= control target key end

     0   :  { %8 = vsyncpa [#allocation3], 0  ;;  %s667_s0 = inlined_call_operand.hbm [shape: bf16[128,128], index: 0, kind: input, shape index: {}]   ;;  %s668_s1 = inlined_call_operand.hbm [shape: bf16[128,128], index: 1, kind: input, shape index: {}]   ;;  %s669_s2 = inlined_call_operand.vmem [shape: f32[1,128], index: 2, kind: input, shape index: {}]   ;;  %s670_s3 = inlined_call_operand.hbm [shape: bf16[128,128], index: 3, kind: output, shape index: {}]  }
   0x1   :  { %9 = vsyncpa [#allocation6], 0 }
   0x2   :  { %10 = vsyncpa [#allocation4], 0  ;;  %s621_s12 = smov [#allocation2]  }
   0x3   :  { %s16_s13 = sshll.u32 %s621_s12, 4  ;;  %s17_s13 = int_to_ptr.vmem [resolvable:$true] %s16_s13 }
   0x4   :  { %s563_s14 = scalar_lea.vmem %s17_s13, 1024  ;;  %p568_p1 = scmp.lt.s32.totalorder %s17_s13, %s17_s13 }
   0x5   :  { %p564_p0 = scmp.ne.s32.totalorder %s17_s13, %s563_s14  ;;  %p569_p2 = scmp.lt.s32.totalorder %s563_s14, %s563_s14 }
   0x7   :  { %p570_p3 = por %p569_p2, %p568_p1 }
   0x9   :  { %p571_p4 = pnand %p570_p3, %p564_p0 }
   0xb   :  { %574 = shalt.err (!%p571_p4)
}
   0xc   :  { %s622_s15 = smov 64   ;;  %s623_s16 = smov 4  }
   0xd   :  { %22 = dma.hbm_to_vmem [thread:$0]  %s667_s0, 1024, %s17_s13, [#allocation3], %s622_s15, %s622_s15, %s623_s16  }
   0xe   :  { %s624_s19 = smov [#allocation5]  }
   0xf   :  { %s28_s20 = sshll.u32 %s624_s19, 4  ;;  %s29_s20 = int_to_ptr.vmem [resolvable:$true] %s28_s20 }
  0x10   :  { %s583_s21 = scalar_lea.vmem %s29_s20, 1024  ;;  %p588_p6 = scmp.lt.s32.totalorder %s29_s20, %s29_s20 }
  0x11   :  { %p584_p5 = scmp.ne.s32.totalorder %s29_s20, %s583_s21  ;;  %p589_p7 = scmp.lt.s32.totalorder %s583_s21, %s583_s21 }
  0x13   :  { %p590_p8 = por %p589_p7, %p588_p6 }
  0x15   :  { %p591_p9 = pnand %p590_p8, %p584_p5 }
  0x17   :  { %594 = shalt.err (!%p591_p9)
}
  0x18   :  { %34 = dma.hbm_to_vmem [thread:$0]  %s668_s1, 1024, %s29_s20, [#allocation6], %s622_s15, %s622_s15, %s623_s16  }
  0x19   :  { %615 = dma.done.wait [#allocation3], 1024  }
  0x1a   :  { %616 = vsyncadd [#allocation3], 4294966272 }
  0x1b   :  { %617 = dma.done.wait [#allocation6], 1024  }
  0x1c   :  { %618 = vsyncadd [#allocation6], 4294966272  ;;  %v539_v0 = vld [vmem:[#allocation5 + $0x38] sm:$0xff]   ;;  %v540_v1 = vld [vmem:[#allocation5 + $0x30] sm:$0xff]  }
  0x1d   :  { %486 = vmatprep.subr.bf16.mxu0 %v539_v0  ;;  %518 = vmatprep.subr.bf16.mxu1 %v539_v0  ;;  %v541_v2 = vld [vmem:[#allocation5 + $0x28] sm:$0xff]   ;;  %v542_v3 = vld [vmem:[#allocation5 + $0x20] sm:$0xff]   ;;  %v543_v6 = vld [vmem:[#allocation5 + $0x18] sm:$0xff]  }
  0x1e   :  { %487 = vmatpush3.bf16.msra.mxu0 %v539_v0  ;;  %526 = vmatpush3.bf16.msra.mxu1 %v539_v0  ;;  %v547_v4 = vld [vmem:[#allocation2] sm:$0xff]   ;;  %v544_v7 = vld [vmem:[#allocation5 + $0x10] sm:$0xff]   ;;  %v545_v8 = vld [vmem:[#allocation5 + $0x8] sm:$0xff]  }
  0x1f   :  { %488 = vmatprep.subr.bf16.mxu0 %v540_v1  ;;  %519 = vmatprep.subr.bf16.mxu1 %v540_v1  ;;  %v548_v5 = vld [vmem:[#allocation2 + $0x20] sm:$0xff]   ;;  %v549_v10 = vld [vmem:[#allocation2 + $0x8] sm:$0xff]   ;;  %v551_v12 = vld [vmem:[#allocation2 + $0x10] sm:$0xff]  }
  0x20   :  { %502 = vmatprep.mubr.bf16.mxu0 %v547_v4  ;;  %510 = vmatprep.mubr.bf16.mxu1 %v548_v5  ;;  %v546_v9 = vld [vmem:[#allocation5] sm:$0xff]   ;;  %v550_v11 = vld [vmem:[#allocation2 + $0x28] sm:$0xff]   ;;  %v552_v13 = vld [vmem:[#allocation2 + $0x30] sm:$0xff]  }
  0x21   :  { %v553_v14 = vld [vmem:[#allocation2 + $0x18] sm:$0xff]   ;;  %v374_v18 = vld [vmem:[%s669_s2] ss:$0 sm:$0xff]  ;;  %s625_s2 = smov [#allocation7]  }
  0x22   :  { %489 = vmatpush3.bf16.msra.mxu0 %v540_v1  ;;  %527 = vmatpush3.bf16.msra.mxu1 %v540_v1  ;;  %v554_v15 = vld [vmem:[#allocation2 + $0x38] sm:$0xff]   ;;  %s361_s24 = sshll.u32 %s625_s2, 4  ;;  %s362_s24 = int_to_ptr.vmem [resolvable:$true] %s361_s24 }
  0x23   :  { %490 = vmatprep.subr.bf16.mxu0 %v541_v2  ;;  %520 = vmatprep.subr.bf16.mxu1 %v541_v2  ;;  %s595_s25 = scalar_lea.vmem %s362_s24, 1024  ;;  %p600_p11 = scmp.lt.s32.totalorder %s362_s24, %s362_s24 }
  0x24   :  { %p596_p10 = scmp.ne.s32.totalorder %s362_s24, %s595_s25  ;;  %p601_p12 = scmp.lt.s32.totalorder %s595_s25, %s595_s25 }
  0x26   :  { %491 = vmatpush3.bf16.msra.mxu0 %v541_v2  ;;  %528 = vmatpush3.bf16.msra.mxu1 %v541_v2  ;;  %p602_p13 = por %p601_p12, %p600_p11 }
  0x27   :  { %492 = vmatprep.subr.bf16.mxu0 %v542_v3  ;;  %521 = vmatprep.subr.bf16.mxu1 %v542_v3 }
  0x28   :  { %p603_p0 = pnand %p602_p13, %p596_p10 }
  0x2a   :  { %493 = vmatpush3.bf16.msra.mxu0 %v542_v3  ;;  %529 = vmatpush3.bf16.msra.mxu1 %v542_v3 }
  0x2b   :  { %494 = vmatprep.subr.bf16.mxu0 %v543_v6  ;;  %522 = vmatprep.subr.bf16.mxu1 %v543_v6 }
  0x2e   :  { %495 = vmatpush3.bf16.msra.mxu0 %v543_v6  ;;  %530 = vmatpush3.bf16.msra.mxu1 %v543_v6 }
  0x2f   :  { %496 = vmatprep.subr.bf16.mxu0 %v544_v7  ;;  %523 = vmatprep.subr.bf16.mxu1 %v544_v7 }
  0x32   :  { %497 = vmatpush3.bf16.msra.mxu0 %v544_v7  ;;  %531 = vmatpush3.bf16.msra.mxu1 %v544_v7 }
  0x33   :  { %498 = vmatprep.subr.bf16.mxu0 %v545_v8  ;;  %524 = vmatprep.subr.bf16.mxu1 %v545_v8 }
  0x36   :  { %499 = vmatpush3.bf16.msra.mxu0 %v545_v8  ;;  %532 = vmatpush3.bf16.msra.mxu1 %v545_v8 }
  0x37   :  { %500 = vmatprep.subr.bf16.mxu0 %v546_v9  ;;  %525 = vmatprep.subr.bf16.mxu1 %v546_v9 }
  0x3a   :  { %501 = vmatpush3.bf16.msra.mxu0 %v546_v9  ;;  %533 = vmatpush3.bf16.msra.mxu1 %v546_v9 }
  0x3d   :  { %503 = vmatmul.mubr.bf16.vlgmr.msra.gmra.mxu0 %v549_v10  ;;  %511 = vmatmul.mubr.bf16.vlgmr.msra.gmra.mxu1 %v550_v11 }
  0x3e   :  { %506 = vmatprep.mubr.bf16.mxu0 %v551_v12  ;;  %514 = vmatprep.mubr.bf16.mxu1 %v552_v13 }
  0x45   :  { %507 = vmatmul.mubr.bf16.gmra.mxu0 %v553_v14  ;;  %515 = vmatmul.mubr.bf16.gmra.mxu1 %v554_v15 }
  0xfd   :  { %v504_v16 = vpop.f32.mrf.mxu0  ;;  %v512_v17 = vpop.f32.mrf.mxu1 }
  0xfe   :  { %v222_v23 = vadd.f32 %v504_v16, %v374_v18  ;;  %v254_v24 = vadd.f32 %v512_v17, %v374_v18 }
  0xff   :  { %v213_v19 = vpop.f32.mrf.mxu0  ;;  %v245_v20 = vpop.f32.mrf.mxu1 }
 0x100   :  { %v214_v27 = vadd.f32 %v374_v18, %v213_v19  ;;  %v246_v28 = vadd.f32 %v374_v18, %v245_v20 }
 0x101   :  { %v505_v21 = vpop.f32.mrf.mxu0  ;;  %v513_v22 = vpop.f32.mrf.mxu1 }
 0x102   :  { %v225_v25 = vadd.f32 %v505_v21, %v374_v18  ;;  %v257_v26 = vadd.f32 %v513_v22, %v374_v18 }
 0x103   :  { %v216_v29 = vpop.f32.mrf.mxu0  ;;  %v248_v30 = vpop.f32.mrf.mxu1 }
 0x104   :  { %v431_v31 = vpack.c.bf16 %v225_v25, %v222_v23  ;;  %v451_v32 = vpack.c.bf16 %v257_v26, %v254_v24  ;;  %v217_v33 = vadd.f32 %v374_v18, %v216_v29  ;;  %v249_v34 = vadd.f32 %v374_v18, %v248_v30 }
 0x105   :  { %v508_v35 = vpop.f32.mrf.mxu0  ;;  %v516_v36 = vpop.f32.mrf.mxu1 }
 0x106   :  { %463 = vst [vmem:[#allocation7 + $0x8] sm:$0xff] %v431_v31   ;;  %467 = vst [vmem:[#allocation7 + $0x28] sm:$0xff] %v451_v32   ;;  %v426_v37 = vpack.c.bf16 %v217_v33, %v214_v27  ;;  %v446_v38 = vpack.c.bf16 %v249_v34, %v246_v28  ;;  %v238_v43 = vadd.f32 %v508_v35, %v374_v18 }
 0x107   :  { %v229_v39 = vpop.f32.mrf.mxu0  ;;  %v261_v40 = vpop.f32.mrf.mxu1  ;;  %v270_v44 = vadd.f32 %v516_v36, %v374_v18 }
 0x108   :  { %427 = vst [vmem:[#allocation7] sm:$0xff] %v426_v37   ;;  %466 = vst [vmem:[#allocation7 + $0x20] sm:$0xff] %v446_v38   ;;  %v230_v47 = vadd.f32 %v374_v18, %v229_v39  ;;  %v262_v48 = vadd.f32 %v374_v18, %v261_v40 }
 0x109   :  { %v509_v41 = vpop.f32.mrf.mxu0  ;;  %v517_v42 = vpop.f32.mrf.mxu1 }
 0x10a   :  { %v241_v45 = vadd.f32 %v509_v41, %v374_v18  ;;  %v273_v46 = vadd.f32 %v517_v42, %v374_v18 }
 0x10b   :  { %v232_v49 = vpop.f32.mrf.mxu0  ;;  %v264_v50 = vpop.f32.mrf.mxu1 }
 0x10c   :  { %v441_v51 = vpack.c.bf16 %v241_v45, %v238_v43  ;;  %v461_v52 = vpack.c.bf16 %v273_v46, %v270_v44  ;;  %v233_v53 = vadd.f32 %v374_v18, %v232_v49  ;;  %v265_v54 = vadd.f32 %v374_v18, %v264_v50 }
 0x10e   :  { %465 = vst [vmem:[#allocation7 + $0x18] sm:$0xff] %v441_v51   ;;  %469 = vst [vmem:[#allocation7 + $0x38] sm:$0xff] %v461_v52   ;;  %v436_v55 = vpack.c.bf16 %v233_v53, %v230_v47  ;;  %v456_v56 = vpack.c.bf16 %v265_v54, %v262_v48 }
 0x110   :  { %464 = vst [vmem:[#allocation7 + $0x10] sm:$0xff] %v436_v55   ;;  %468 = vst [vmem:[#allocation7 + $0x30] sm:$0xff] %v456_v56  }
 0x111   :  { %606 = shalt.err (!%p603_p0)
}
 0x112   :  { %367 = dma.vmem_to_hbm [thread:$0]  %s362_s24, 1024, %s670_s3, [#allocation4], %s622_s15, %s622_s15, %s623_s16  }
 0x113   :  { %619 = dma.done.wait [#allocation4], 1024  }
 0x114   :  { %620 = vsyncadd [#allocation4], 4294966272 }
 0x115   :  { %371 = vsyncpa [#allocation3], 1 }
 0x116   :  { %372 = vsyncpa [#allocation6], 1 }
 0x117   :  { %373 = vsyncpa [#allocation4], 1 }

</bundles_post_ra>
